<compile_context>
chip_gen: v7x
topology: tpu7x:2x2x1
jax: 0.10.0
libtpu: 0.0.40
codegen_flags: <defaults>
</compile_context>

<pallas_src>
import math
import functools

import jax
import jax.numpy as jnp
import numpy as np
from jax import lax
from jax.experimental import pallas as pl
from jax.experimental.pallas import tpu as pltpu

_LN_EPS = 1e-5
_NEG_INF = -1e30


def _round_up(x, m):
    return (x + m - 1) // m * m


def _layernorm_f32(v, scale, bias):
    """LayerNorm with biased variance, rsqrt on the EUP, f32 statistics."""
    mean = jnp.mean(v, axis=-1, keepdims=True)
    var = jnp.mean((v - mean) ** 2, axis=-1, keepdims=True)   # unbiased=False
    return (v - mean) * lax.rsqrt(var + _LN_EPS) * scale + bias


# --------------------------- stage 1: LN1 + QKV -------------------------------

def _ln_qkv_kernel(x_ref, ln1_s_ref, ln1_b_ref, wqkv_ref, bqkv_ref,
                   q_ref, k_ref, v_ref, *, head_dim, compute_dtype):
    x = x_ref[...].astype(jnp.float32)             # (nt, D)
    D = x.shape[-1]
    h = _layernorm_f32(x, ln1_s_ref[...], ln1_b_ref[...])
    # One fused (D, 3D) matmul instead of three (D, D) matmuls.
    qkv = jnp.dot(h.astype(compute_dtype), wqkv_ref[...],
                  preferred_element_type=jnp.float32) + bqkv_ref[...]
    scale = jnp.float32(1.0 / math.sqrt(head_dim))  # fold 1/sqrt(hd) into q
    q_ref[...] = (qkv[:, :D] * scale).astype(q_ref.dtype)
    k_ref[...] = qkv[:, D:2 * D].astype(k_ref.dtype)
    v_ref[...] = qkv[:, 2 * D:].astype(v_ref.dtype)


# ---------------------- stage 2: flash causal attention -----------------------

def _flash_attn_kernel(qt_ref, kt_ref, q_ref, k_ref, v_ref, o_ref,
                       m_ref, l_ref, acc_ref, *, tq, tk,
                       compute_dtype, exp_dtype, approx_recip):
    # Flattened lower-triangular schedule: qt/kt map grid step -> (qi, ki).
    step = pl.program_id(1)
    qi = qt_ref[step]
    ki = kt_ref[step]

    @pl.when(ki == 0)
    def _init():
        m_ref[...] = jnp.full_like(m_ref, -jnp.inf)
        l_ref[...] = jnp.zeros_like(l_ref)
        acc_ref[...] = jnp.zeros_like(acc_ref)

    q = q_ref[0]                                   # (tq, hd), scale pre-folded
    k = k_ref[0]                                   # (tk, hd)
    v = v_ref[0]                                   # (tk, hd)

    s = lax.dot_general(q, k, (((1,), (1,)), ((), ())),
                        preferred_element_type=jnp.float32)       # (tq, tk)
    # Per-tile causal mask from grid offsets (all-false on off-diagonal tiles).
    row = qi * tq + lax.broadcasted_iota(jnp.int32, (tq, tk), 0)
    col = ki * tk + lax.broadcasted_iota(jnp.int32, (tq, tk), 1)
    s = jnp.where(col > row, jnp.float32(_NEG_INF), s)

    m_prev = m_ref[...]                            # (tq, 1) f32
    m_new = jnp.maximum(m_prev, jnp.max(s, axis=-1, keepdims=True))
    alpha = jnp.exp(m_prev - m_new)                # f32, tiny tensor
    p = jnp.exp((s - m_new).astype(exp_dtype))     # bf16 EUP on v6e/v7x
    l_ref[...] = alpha * l_ref[...] + jnp.sum(p.astype(jnp.float32),
                                              axis=-1, keepdims=True)
    m_ref[...] = m_new
    acc_ref[...] = alpha * acc_ref[...] + jnp.dot(
        p.astype(compute_dtype), v, preferred_element_type=jnp.float32)

    # tq == tk, so the diagonal tile is the last visited KV tile for this q tile.
    @pl.when(ki == qi)
    def _finalize():
        inv_l = pl.reciprocal(l_ref[...], approx=approx_recip)    # EUP
        o_ref[0] = (acc_ref[...] * inv_l).astype(o_ref.dtype)


# --------------- stage 3: out-proj + residual + LN2 + FFN ---------------------

def _out_ffn_kernel(x_ref, ctx_ref, wo_ref, bo_ref, ln2_s_ref, ln2_b_ref,
                    w1_ref, b1_ref, w2_ref, b2_ref, o_ref,
                    x1_ref, h2_ref, acc_ref, *, compute_dtype, gelu_dtype):
    fi = pl.program_id(1)
    nf = pl.num_programs(1)

    @pl.when(fi == 0)
    def _first():
        attn = jnp.dot(ctx_ref[...], wo_ref[...],
                       preferred_element_type=jnp.float32) + bo_ref[...]
        x1 = x_ref[...].astype(jnp.float32) + attn               # residual 1
        x1_ref[...] = x1
        h2_ref[...] = _layernorm_f32(
            x1, ln2_s_ref[...], ln2_b_ref[...]).astype(h2_ref.dtype)
        acc_ref[...] = jnp.zeros_like(acc_ref)

    # One chunk of the hidden (4D) dimension per grid step (n_f == 1 => whole
    # FFN with W1/W2 VMEM-resident across the token sweep).
    f = jnp.dot(h2_ref[...], w1_ref[...],
                preferred_element_type=jnp.float32) + b1_ref[...]
    f = f.astype(gelu_dtype)
    c = math.sqrt(2.0 / math.pi)
    f = 0.5 * f * (1.0 + jnp.tanh(c * (f + 0.044715 * f * f * f)))  # tanh GELU
    acc_ref[...] += jnp.dot(f.astype(compute_dtype), w2_ref[...],
                            preferred_element_type=jnp.float32)

    @pl.when(fi == nf - 1)
    def _last():
        o_ref[...] = (x1_ref[...] + acc_ref[...] + b2_ref[...]).astype(o_ref.dtype)


# ---------------------------------- wrapper -----------------------------------

def transformer_block(x, params, *, num_heads,
                      compute_dtype=jnp.bfloat16,       # production default
                      t_tile=None, n_tile=None, f_chunk=None,
                      transcendental_dtype=None,        # None -> compute_dtype
                      approx_recip=True,
                      weight_buffers=None,              # 1 on v7x/v5e large D
                      vmem_limit_bytes=None):
    B, T, D = x.shape
    D4 = params["w1"].shape[1]
    assert D % num_heads == 0
    hd = D // num_heads

    cdt = compute_dtype
    f32 = jnp.float32
    tdt = cdt if transcendental_dtype is None else transcendental_dtype

    # ---- tiling ----------------------------------------------------------
    if t_tile is None:      # stage-2 seq tile (>=256 feeds v6e/v7x MXU; 128 v5e)
        t_tile = 256 if T >= 256 else (128 if T >= 128 else _round_up(T, 8))
    t_tile = _round_up(t_tile, 8)
    T_pad = _round_up(T, t_tile)                  # pad T; slice tail at the end
    tq = tk = t_tile
    n_tq = T_pad // t_tile

    N = B * T_pad                                 # flattened (batch, seq) tokens
    if n_tile is None:      # stage-1/3 token tile, decoupled from t_tile
        n_tile = next(c for c in (1024, 512, 256, 128, 64, 32, 16, 8)
                      if N % c == 0)
    assert N % n_tile == 0
    n_n = N // n_tile

    if f_chunk is None:     # keep W1/W2 fully VMEM-resident when they fit
        w_bytes = 2 * D * D4 * jnp.dtype(cdt).itemsize
        if w_bytes <= 24 * 1024 * 1024:
            f_chunk = D4
        else:
            f_chunk = next((c for c in (2048, 1024, 512, 256, 128)
                            if D4 % c == 0), D4)
    assert D4 % f_chunk == 0
    n_f = D4 // f_chunk

    # ---- parameter prep (host side, one-off) ------------------------------
    def row(p):  # biases / LN params as (1, D)-shaped rows
        return jnp.reshape(p, (1, -1))

    wqkv = jnp.concatenate([params["wq"], params["wk"], params["wv"]],
                           axis=1).astype(cdt)
    bqkv = jnp.concatenate([row(params["bq"]), row(params["bk"]),
                            row(params["bv"])], axis=1).astype(f32)
    wo, bo = params["wo"].astype(cdt), row(params["bo"]).astype(f32)
    w1, b1 = params["w1"].astype(cdt), row(params["b1"]).astype(f32)
    w2, b2 = params["w2"].astype(cdt), row(params["b2"]).astype(f32)
    ln1_s, ln1_b = row(params["ln1_scale"]).astype(f32), row(params["ln1_bias"]).astype(f32)
    ln2_s, ln2_b = row(params["ln2_scale"]).astype(f32), row(params["ln2_bias"]).astype(f32)

    if T_pad != T:
        x_p = jnp.pad(x, ((0, 0), (0, T_pad - T), (0, 0)))
    else:
        x_p = x
    x_flat = x_p.reshape(N, D)

    # Optional single-buffering of constant-index weight blocks (v7x 64 MiB /
    # v5e 16 MiB scoped-VMEM budgets at large D).
    wkw = {} if weight_buffers is None else {"pipeline_mode": pl.Buffered(weight_buffers)}
    wkw_ffn = wkw if n_f == 1 else {}             # only when index map is constant

    def cparams(dims):
        return pltpu.CompilerParams(dimension_semantics=dims,
                                    vmem_limit_bytes=vmem_limit_bytes)

    # ---- stage 1: LN1 + fused QKV projection ------------------------------
    q, k, v = pl.pallas_call(
        functools.partial(_ln_qkv_kernel, head_dim=hd, compute_dtype=cdt),
        out_shape=tuple(jax.ShapeDtypeStruct((N, D), cdt) for _ in range(3)),
        grid_spec=pltpu.PrefetchScalarGridSpec(
            num_scalar_prefetch=0,
            grid=(n_n,),
            in_specs=[
                pl.BlockSpec((n_tile, D), lambda i: (i, 0)),          # x
                pl.BlockSpec((1, D), lambda i: (0, 0)),               # ln1 scale
                pl.BlockSpec((1, D), lambda i: (0, 0)),               # ln1 bias
                pl.BlockSpec((D, 3 * D), lambda i: (0, 0), **wkw),    # Wqkv (resident)
                pl.BlockSpec((1, 3 * D), lambda i: (0, 0)),           # bqkv
            ],
            out_specs=tuple(pl.BlockSpec((n_tile, D), lambda i: (i, 0))
                            for _ in range(3)),
        ),
        compiler_params=cparams(("parallel",)),
    )(x_flat, ln1_s, ln1_b, wqkv, bqkv)

    # Head-major layout for stage 2 (layout plumbing in XLA, cheap vs attention).
    def to_heads(t):
        return (t.reshape(B, T_pad, num_heads, hd)
                 .transpose(0, 2, 1, 3)
                 .reshape(B * num_heads, T_pad, hd))
    qh, kh, vh = to_heads(q), to_heads(k), to_heads(v)

    # Flattened lower-triangular (qi, ki) schedule: masked KV tiles never issued.
    q_idx, k_idx = [], []
    for i in range(n_tq):
        for j in range(i + 1):
            q_idx.append(i)
            k_idx.append(j)
    qtab = jnp.asarray(np.asarray(q_idx, dtype=np.int32))
    ktab = jnp.asarray(np.asarray(k_idx, dtype=np.int32))
    n_steps = len(q_idx)
    BH = B * num_heads

    # ---- stage 2: flash attention (heads on the grid, causal skip) --------
    ctx_h = pl.pallas_call(
        functools.partial(_flash_attn_kernel, tq=tq, tk=tk, compute_dtype=cdt,
                          exp_dtype=tdt, approx_recip=approx_recip),
        out_shape=jax.ShapeDtypeStruct((BH, T_pad, hd), cdt),
        grid_spec=pltpu.PrefetchScalarGridSpec(
            num_scalar_prefetch=2,
            grid=(BH, n_steps),
            in_specs=[
                pl.BlockSpec((1, tq, hd), lambda bh, s, qt, kt: (bh, qt[s], 0)),
                pl.BlockSpec((1, tk, hd), lambda bh, s, qt, kt: (bh, kt[s], 0)),
                pl.BlockSpec((1, tk, hd), lambda bh, s, qt, kt: (bh, kt[s], 0)),
            ],
            out_specs=pl.BlockSpec((1, tq, hd),
                                   lambda bh, s, qt, kt: (bh, qt[s], 0)),
            scratch_shapes=[
                pltpu.VMEM((tq, 1), jnp.float32),      # running max
                pltpu.VMEM((tq, 1), jnp.float32),      # running sum
                pltpu.VMEM((tq, hd), jnp.float32),     # per-head output acc
            ],
        ),
        compiler_params=cparams(("parallel", "arbitrary")),
    )(qtab, ktab, qh, kh, vh)

    ctx = (ctx_h.reshape(B, num_heads, T_pad, hd)
                .transpose(0, 2, 1, 3)
                .reshape(N, D))

    # ---- stage 3: out-proj + residual + LN2 + FFN + residual --------------
    out_flat = pl.pallas_call(
        functools.partial(_out_ffn_kernel, compute_dtype=cdt, gelu_dtype=tdt),
        out_shape=jax.ShapeDtypeStruct((N, D), x.dtype),
        grid_spec=pltpu.PrefetchScalarGridSpec(
            num_scalar_prefetch=0,
            grid=(n_n, n_f),
            in_specs=[
                pl.BlockSpec((n_tile, D), lambda i, f: (i, 0)),        # x (residual)
                pl.BlockSpec((n_tile, D), lambda i, f: (i, 0)),        # attention ctx
                pl.BlockSpec((D, D), lambda i, f: (0, 0), **wkw),      # Wo (resident)
                pl.BlockSpec((1, D), lambda i, f: (0, 0)),             # bo
                pl.BlockSpec((1, D), lambda i, f: (0, 0)),             # ln2 scale
                pl.BlockSpec((1, D), lambda i, f: (0, 0)),             # ln2 bias
                pl.BlockSpec((D, f_chunk), lambda i, f: (0, f), **wkw_ffn),   # W1
                pl.BlockSpec((1, f_chunk), lambda i, f: (0, f)),       # b1 chunk
                pl.BlockSpec((f_chunk, D), lambda i, f: (f, 0), **wkw_ffn),   # W2
                pl.BlockSpec((1, D), lambda i, f: (0, 0)),             # b2
            ],
            out_specs=pl.BlockSpec((n_tile, D), lambda i, f: (i, 0)),
            scratch_shapes=[
                pltpu.VMEM((n_tile, D), jnp.float32),   # x1 (residual-1 result)
                pltpu.VMEM((n_tile, D), cdt),           # LN2 output (matmul input)
                pltpu.VMEM((n_tile, D), jnp.float32),   # FFN accumulator
            ],
        ),
        compiler_params=cparams(("parallel", "arbitrary")),
    )(x_flat, ctx, wo, bo, ln2_s, ln2_b, w1, b1, w2, b2)

    out = out_flat.reshape(B, T_pad, D)
    if T_pad != T:
        out = out[:, :T, :]
    return out


# --------------------------- pure-JAX reference -------------------------------

def transformer_block_ref(x, params, *, num_heads):
    B, T, D = x.shape
    hd = D // num_heads
    eps = 1e-5

    def ln(v, s, b):
        m = jnp.mean(v, -1, keepdims=True)
        var = jnp.mean((v - m) ** 2, -1, keepdims=True)
        return s * ((v - m) / jnp.sqrt(var + eps)) + b

    h = ln(x, params["ln1_scale"], params["ln1_bias"])
    q = h @ params["wq"] + params["bq"]
    k = h @ params["wk"] + params["bk"]
    v = h @ params["wv"] + params["bv"]
    q = q.reshape(B, T, num_heads, hd)
    k = k.reshape(B, T, num_heads, hd)
    v = v.reshape(B, T, num_heads, hd)
    scores = jnp.einsum("bthd,bshd->bhts", q, k) / math.sqrt(hd)
    mask = jnp.triu(jnp.ones((T, T), bool), k=1)
    scores = jnp.where(mask[None, None], -1e30, scores)
    p = jax.nn.softmax(scores, axis=-1)
    ctx = jnp.einsum("bhts,bshd->bthd", p, v).reshape(B, T, D)
    x1 = x + ctx @ params["wo"] + params["bo"]

    h2 = ln(x1, params["ln2_scale"], params["ln2_bias"])
    f = h2 @ params["w1"] + params["b1"]
    f = 0.5 * f * (1.0 + jnp.tanh(math.sqrt(2.0 / math.pi) * (f + 0.044715 * f ** 3)))
    f = f @ params["w2"] + params["b2"]
    return x1 + f


# ---------------------------------- main --------------------------------------

if __name__ == "__main__":
    # Small GPT2Config-like settings, multi-tile so the triangular flash
    # schedule, head-grid path and chunked FFN accumulator are all exercised.
    B, T, D, H = 2, 16, 64, 4
    D4 = 4 * D

    key = jax.random.PRNGKey(0)
    keys = jax.random.split(key, 16)

    def w(kk, shape, scale=0.02):
        return (scale * jax.random.normal(kk, shape)).astype(jnp.float32)

    params = {
        "wq": w(keys[0], (D, D)),  "bq": w(keys[1], (1, D)),
        "wk": w(keys[2], (D, D)),  "bk": w(keys[3], (1, D)),
        "wv": w(keys[4], (D, D)),  "bv": w(keys[5], (1, D)),
        "wo": w(keys[6], (D, D)),  "bo": w(keys[7], (1, D)),
        "ln1_scale": jnp.ones((1, D), jnp.float32),
        "ln1_bias":  jnp.zeros((1, D), jnp.float32),
        "ln2_scale": jnp.ones((1, D), jnp.float32),
        "ln2_bias":  jnp.zeros((1, D), jnp.float32),
        "w1": w(keys[8], (D, D4)), "b1": w(keys[9], (1, D4)),
        "w2": w(keys[10], (D4, D)), "b2": w(keys[11], (1, D)),
    }
    x = jax.random.normal(keys[12], (B, T, D), dtype=jnp.float32)

    ref = jax.block_until_ready(transformer_block_ref(x, params, num_heads=H))

    # f32 parity check with small tiles: 2 q-tiles -> 3 triangular flash steps
    # (instead of 4 rectangular), 2 token tiles in stages 1/3, 2 FFN chunks.
    out = transformer_block(x, params, num_heads=H,
                            compute_dtype=jnp.float32, approx_recip=False,
                            t_tile=8, n_tile=16, f_chunk=128)
    out = jax.block_until_ready(out)
    np.testing.assert_allclose(np.asarray(out), np.asarray(ref),
                               rtol=1e-4, atol=1e-4)

    # Production defaults: bf16 matmul inputs + bf16 exp/GELU (f32 LN/softmax
    # statistics and f32 accumulators), approximate EUP reciprocal, resident
    # FFN weights (n_f == 1), auto tiles.
    out_bf16 = transformer_block(x, params, num_heads=H)
    out_bf16 = jax.block_until_ready(out_bf16)
    np.testing.assert_allclose(np.asarray(out_bf16), np.asarray(ref),
                               rtol=5e-2, atol=5e-2)

    print("KERNEL_OK")
</pallas_src>

<mosaic_0001>
module attributes {stable_mosaic.version = 11 : i64} {
  func.func @_ln_qkv_kernel(%arg0: i32, %arg1: memref<16x64xf32, #tpu.memory_space<vmem>>, %arg2: memref<1x64xf32, #tpu.memory_space<vmem>>, %arg3: memref<1x64xf32, #tpu.memory_space<vmem>>, %arg4: memref<64x192xf32, #tpu.memory_space<vmem>>, %arg5: memref<1x192xf32, #tpu.memory_space<vmem>>, %arg6: memref<16x64xf32, #tpu.memory_space<vmem>>, %arg7: memref<16x64xf32, #tpu.memory_space<vmem>>, %arg8: memref<16x64xf32, #tpu.memory_space<vmem>>) attributes {dimension_semantics = [#tpu.dimension_semantics<parallel>], iteration_bounds = array<i64: 2>, scalar_prefetch = 0 : i64, scratch_operands = 0 : i64, tpu.core_type = #tpu.core_type<tc>, window_params = [{transform_indices = @transform_0, window_bounds = array<i64: 16, 64>}, {pipeline_mode = #tpu.pipeline_mode<synchronous>, transform_indices = @transform_1, window_bounds = array<i64: 1, 64>}, {pipeline_mode = #tpu.pipeline_mode<synchronous>, transform_indices = @transform_2, window_bounds = array<i64: 1, 64>}, {pipeline_mode = #tpu.pipeline_mode<synchronous>, transform_indices = @transform_3, window_bounds = array<i64: 64, 192>}, {pipeline_mode = #tpu.pipeline_mode<synchronous>, transform_indices = @transform_4, window_bounds = array<i64: 1, 192>}, {transform_indices = @transform_5, window_bounds = array<i64: 16, 64>}, {transform_indices = @transform_6, window_bounds = array<i64: 16, 64>}, {transform_indices = @transform_7, window_bounds = array<i64: 16, 64>}]} {
    %c0 = arith.constant 0 : index
    %c0_0 = arith.constant 0 : index
    %0 = vector.load %arg1[%c0, %c0_0] : memref<16x64xf32, #tpu.memory_space<vmem>>, vector<16x64xf32>
    %c0_1 = arith.constant 0 : index
    %c0_2 = arith.constant 0 : index
    %1 = vector.load %arg2[%c0_1, %c0_2] : memref<1x64xf32, #tpu.memory_space<vmem>>, vector<1x64xf32>
    %c0_3 = arith.constant 0 : index
    %c0_4 = arith.constant 0 : index
    %2 = vector.load %arg3[%c0_3, %c0_4] : memref<1x64xf32, #tpu.memory_space<vmem>>, vector<1x64xf32>
    %cst = arith.constant dense<0.000000e+00> : vector<16xf32>
    %3 = vector.multi_reduction <add>, %0, %cst [1] : vector<16x64xf32> to vector<16xf32>
    %4 = vector.shape_cast %3 : vector<16xf32> to vector<16x1xf32>
    %cst_5 = arith.constant 6.400000e+01 : f32
    %5 = vector.broadcast %cst_5 : f32 to vector<16x1xf32>
    %6 = arith.divf %4, %5 : vector<16x1xf32>
    %7 = vector.broadcast %6 : vector<16x1xf32> to vector<16x64xf32>
    %8 = arith.subf %0, %7 : vector<16x64xf32>
    %9 = arith.mulf %8, %8 : vector<16x64xf32>
    %cst_6 = arith.constant dense<0.000000e+00> : vector<16xf32>
    %10 = vector.multi_reduction <add>, %9, %cst_6 [1] : vector<16x64xf32> to vector<16xf32>
    %11 = vector.shape_cast %10 : vector<16xf32> to vector<16x1xf32>
    %cst_7 = arith.constant 6.400000e+01 : f32
    %12 = vector.broadcast %cst_7 : f32 to vector<16x1xf32>
    %13 = arith.divf %11, %12 : vector<16x1xf32>
    %14 = vector.broadcast %6 : vector<16x1xf32> to vector<16x64xf32>
    %15 = arith.subf %0, %14 : vector<16x64xf32>
    %cst_8 = arith.constant 9.99999974E-6 : f32
    %16 = vector.broadcast %cst_8 : f32 to vector<16x1xf32>
    %17 = arith.addf %13, %16 : vector<16x1xf32>
    %18 = math.rsqrt %17 : vector<16x1xf32>
    %19 = vector.broadcast %18 : vector<16x1xf32> to vector<16x64xf32>
    %20 = arith.mulf %15, %19 : vector<16x64xf32>
    %21 = vector.broadcast %1 : vector<1x64xf32> to vector<16x64xf32>
    %22 = arith.mulf %20, %21 : vector<16x64xf32>
    %23 = vector.broadcast %2 : vector<1x64xf32> to vector<16x64xf32>
    %24 = arith.addf %22, %23 : vector<16x64xf32>
    %c0_9 = arith.constant 0 : index
    %c0_10 = arith.constant 0 : index
    %25 = vector.load %arg4[%c0_9, %c0_10] : memref<64x192xf32, #tpu.memory_space<vmem>>, vector<64x192xf32>
    %cst_11 = arith.constant dense<0.000000e+00> : vector<16x192xf32>
    %26 = tpu.matmul %24, %25, %cst_11 {dimension_numbers = #tpu.dot_dimension_numbers<[1], [0], [0], [1], [0, 0, 1, 1], [], []>} : vector<16x64xf32>, vector<64x192xf32>, vector<16x192xf32> -> vector<16x192xf32>
    %c0_12 = arith.constant 0 : index
    %c0_13 = arith.constant 0 : index
    %27 = vector.load %arg5[%c0_12, %c0_13] : memref<1x192xf32, #tpu.memory_space<vmem>>, vector<1x192xf32>
    %28 = vector.broadcast %27 : vector<1x192xf32> to vector<16x192xf32>
    %29 = arith.addf %26, %28 : vector<16x192xf32>
    %30 = vector.extract_strided_slice %29 {offsets = [0, 0], sizes = [16, 64], strides = [1, 1]} : vector<16x192xf32> to vector<16x64xf32>
    %cst_14 = arith.constant 2.500000e-01 : f32
    %31 = vector.broadcast %cst_14 : f32 to vector<16x64xf32>
    %32 = arith.mulf %30, %31 : vector<16x64xf32>
    %c0_15 = arith.constant 0 : index
    %c0_16 = arith.constant 0 : index
    %33 = vector.load %arg6[%c0_15, %c0_16] : memref<16x64xf32, #tpu.memory_space<vmem>>, vector<16x64xf32>
    tpu.vector_store %arg6[%c0_15, %c0_16], %32 {strides = array<i32>} : memref<16x64xf32, #tpu.memory_space<vmem>>, vector<16x64xf32>,
    %34 = vector.extract_strided_slice %29 {offsets = [0, 64], sizes = [16, 64], strides = [1, 1]} : vector<16x192xf32> to vector<16x64xf32>
    %c0_17 = arith.constant 0 : index
    %c0_18 = arith.constant 0 : index
    %35 = vector.load %arg7[%c0_17, %c0_18] : memref<16x64xf32, #tpu.memory_space<vmem>>, vector<16x64xf32>
    tpu.vector_store %arg7[%c0_17, %c0_18], %34 {strides = array<i32>} : memref<16x64xf32, #tpu.memory_space<vmem>>, vector<16x64xf32>,
    %36 = vector.extract_strided_slice %29 {offsets = [0, 128], sizes = [16, 64], strides = [1, 1]} : vector<16x192xf32> to vector<16x64xf32>
    %c0_19 = arith.constant 0 : index
    %c0_20 = arith.constant 0 : index
    %37 = vector.load %arg8[%c0_19, %c0_20] : memref<16x64xf32, #tpu.memory_space<vmem>>, vector<16x64xf32>
    tpu.vector_store %arg8[%c0_19, %c0_20], %36 {strides = array<i32>} : memref<16x64xf32, #tpu.memory_space<vmem>>, vector<16x64xf32>,
    return
  }
  func.func @transform_0(%arg0: i32) -> (i32, i32) {
    %c0_i32 = arith.constant 0 : i32
    %c0_i32_0 = arith.constant 0 : i32
    return %arg0, %c0_i32 : i32, i32
  }
  func.func @transform_1(%arg0: i32) -> (i32, i32) {
    %c0_i32 = arith.constant 0 : i32
    %c0_i32_0 = arith.constant 0 : i32
    %c0_i32_1 = arith.constant 0 : i32
    return %c0_i32, %c0_i32_0 : i32, i32
  }
  func.func @transform_2(%arg0: i32) -> (i32, i32) {
    %c0_i32 = arith.constant 0 : i32
    %c0_i32_0 = arith.constant 0 : i32
    %c0_i32_1 = arith.constant 0 : i32
    return %c0_i32, %c0_i32_0 : i32, i32
  }
  func.func @transform_3(%arg0: i32) -> (i32, i32) {
    %c0_i32 = arith.constant 0 : i32
    %c0_i32_0 = arith.constant 0 : i32
    %c0_i32_1 = arith.constant 0 : i32
    return %c0_i32, %c0_i32_0 : i32, i32
  }
  func.func @transform_4(%arg0: i32) -> (i32, i32) {
    %c0_i32 = arith.constant 0 : i32
    %c0_i32_0 = arith.constant 0 : i32
    %c0_i32_1 = arith.constant 0 : i32
    return %c0_i32, %c0_i32_0 : i32, i32
  }
  func.func @transform_5(%arg0: i32) -> (i32, i32) {
    %c0_i32 = arith.constant 0 : i32
    %c0_i32_0 = arith.constant 0 : i32
    return %arg0, %c0_i32 : i32, i32
  }
  func.func @transform_6(%arg0: i32) -> (i32, i32) {
    %c0_i32 = arith.constant 0 : i32
    %c0_i32_0 = arith.constant 0 : i32
    return %arg0, %c0_i32 : i32, i32
  }
  func.func @transform_7(%arg0: i32) -> (i32, i32) {
    %c0_i32 = arith.constant 0 : i32
    %c0_i32_0 = arith.constant 0 : i32
    return %arg0, %c0_i32 : i32, i32
  }
}

</mosaic_0001>

<bundles_post_ra>
// kernel: tpu_custom_call.1
= control target key start
LH: loop header
LB: loop body
LE: loop exit
PB: predicated region body
PF: predicated region fallthrough
CT: control target
= control target key end

     0   :  { %s1409_s0 = inlined_call_operand.hbm [shape: f32[32,64], index: 0, kind: input, shape index: {}]   ;;  %s1410_s1 = inlined_call_operand.vmem [shape: f32[1,64], index: 1, kind: input, shape index: {}]   ;;  %s1411_s2 = inlined_call_operand.vmem [shape: f32[1,64], index: 2, kind: input, shape index: {}]   ;;  %s1412_s3 = inlined_call_operand.hbm [shape: f32[64,192], index: 3, kind: input, shape index: {}]   ;;  %s1413_s4 = inlined_call_operand.vmem [shape: f32[1,192], index: 4, kind: input, shape index: {}]   ;;  %s1414_s5 = inlined_call_operand.hbm [shape: f32[32,64], index: 5, kind: output, shape index: {0}]   ;;  %s1415_s6 = inlined_call_operand.hbm [shape: f32[32,64], index: 6, kind: output, shape index: {1}]   ;;  %s1416_s7 = inlined_call_operand.hbm [shape: f32[32,64], index: 7, kind: output, shape index: {2}]  }
   0x1   :  { %1421 = sst [smem:[#allocation15_spill]] %s1409_s0 }
   0x2   :  { %1422 = sst [smem:[#allocation16_spill]] %s1410_s1 }
   0x3   :  { %13 = vsyncpa [#allocation3], 0 }
   0x4   :  { %15 = vsyncpa [#allocation3 + $0x1], 0 }
   0x5   :  { %16 = vsyncpa [#allocation6], 0 }
   0x6   :  { %17 = vsyncpa [#allocation4], 0 }
   0x7   :  { %19 = vsyncpa [#allocation4 + $0x1], 0 }
   0x8   :  { %20 = vsyncpa [#allocation9], 0 }
   0x9   :  { %22 = vsyncpa [#allocation9 + $0x1], 0  ;;  %s1087_s24 = smov 0   ;;  %s1089_s25 = smov 0  }
   0xa   :  { %s1091_s26 = smov 0   ;;  %s1093_s27 = smov 0  }
   0xb LB: > { %s1108_s28 = sadd.s32 4294967295, %s1032_s27   ;;  %s1420_s29 = sadd.s32 4294967294, %s1032_s27   ;;  %s1032_s27 = sphi %s1093_s27, %s1443_s27   ;;  %s1028_s26 = sphi %s1091_s26, %s1442_s26   ;;  %s1024_s25 = sphi %s1089_s25, %s1441_s25   ;;  %s1020_s24 = sphi %s1087_s24, %s1440_s24  }
   0xc   : > { %p48_p0 = scmp.ne.s32.totalorder %s1024_s25, %s1020_s24  ;;  %p1417_p1 = scmp.eq.s32.totalorder %s1108_s28, 0 }
   0xd   : > { %p162_p3 = scmp.eq.s32.totalorder %s1420_s29, 1  ;;  %p710_p5 = scmp.ge.s32.totalorder %s1032_s27, 1 }
   0xe   : > { %p1119_p4 = por %p1417_p1, %p48_p0  ;;  %p221_p7 = scmp.lt.s32.totalorder %s1032_s27, 3 }
   0xf   : > { %p1124_p6 = por %p162_p3, %p48_p0  ;;  %s1034_s10 = smov [#allocation5]  }
  0x10   : > { %s1423_s30 = scalar_select %p1119_p4, 1, 0 }
  0x11   : > { %s1424_s8 = scalar_select %p1124_p6, 1, 0 }
  0x12   : > { %p1129_p8 = pnand %p710_p5, %p221_p7  ;;  %s239_s11 = sshll.u32 %s1034_s10, 4  ;;  %s1133_s11 = int_to_ptr.vmem [resolvable:$true] %s239_s11 }
  0x13   : > { %s1145_s13 = sadd.s32 1, %s1032_s27   ;;  %s35_s14 = sadd.s32 1, %s1028_s26 }
  0x14   : > { %s1425_s9 = scalar_select %p1129_p8, 1, 0 }
  0x15   : > { %p777_p9 = pneg %p1129_p8  ;;  %s32_s15 = ssub.s32 %s1032_s27, %s1145_s13 }
  0x16   : > { %s844_s18 = scalar_lea.hbm %s1412_s3, 2048 }
  0x17   : > { %p1140_p11 = pnand %p777_p9, %p1417_p1  ;;  %p845_p12 = scmp.ne.s32.totalorder %s1412_s3, %s844_s18 }
  0x18   : > { %p851_p5 = scmp.lt.u32.totalorder %s844_s18, %s1412_s3 }
  0x19   : > { %p846_p13 = pneg %p1140_p11 }
  0x1b   : > { %p847_p0 = pnand %p846_p13, %p845_p12 }
  0x1d   : > { %p848_p3 = pneg %p847_p0 }
  0x1f   : > { %p853_p7 = pnand %p851_p5, %p848_p3 }
  0x21   : > { %856 = shalt.err (!%p853_p7)
}
  0x22   : > { %s857_s23 = scalar_lea.vmem %s1133_s11, 2048  ;;  %p865_p2 = scmp.lt.s32.totalorder %s1133_s11, %s1133_s11 }
  0x23   : > { %p858_p9 = scmp.ne.s32.totalorder %s1133_s11, %s857_s23  ;;  %p866_p6 = scmp.lt.s32.totalorder %s857_s23, %s857_s23 }
  0x25   : > { %p860_p10 = pnand %p858_p9, %p846_p13  ;;  %p867_p4 = por %p866_p6, %p865_p2 }
  0x27   : > { %p861_p1 = pneg %p860_p10 }
  0x29   : > { %p868_p8 = pnand %p867_p4, %p861_p1 }
  0x2b   : > { %871 = shalt.err (!%p868_p8)
}
  0x2c   : > { %s1035_s10 = smov 256   ;;  %s1036_s16 = smov 16  }
  0x2d   : > { %780 = dma.hbm_to_vmem [thread:$0]  (!%p1140_p11), %s1412_s3, 2048, %s1133_s11, [#allocation6], %s1035_s10, %s1035_s10, %s1036_s16  }
  0x2e   : > { %p33_p2 = scmp.eq.s32.totalorder %s32_s15, 0  ;;  %p42_p1 = scmp.ne.s32.totalorder %s1028_s26, %s1024_s25 }
  0x2f   : > { %p43_p4 = scmp.eq.s32.totalorder %s1032_s27, 0  ;;  %p796_p6 = scmp.lt.s32.totalorder %s1032_s27, 2 }
  0x30   : > { %s1176_s19 = scalar_select %p33_p2, %s1028_s26, %s35_s14  }
  0x31   : > { %p44_p8 = por %p43_p4, %p42_p1  ;;  %p1427_p10 = scmp.eq.s32.totalorder %s1108_s28, 1 }
  0x32   : > { %s256_s21 = sand.u32 1, %s1028_s26   ;;  %s737_s22 = sshll.u32 %s1032_s27, 8 }
  0x33   : > { %p1180_p12 = por %p1427_p10, %p42_p1  ;;  %s713_s23 = sshll.u32 %s256_s21, 4 }
  0x34   : > { %s1429_s0 = sld [smem:[#allocation15_spill]]  ;;  %s260_s11 = scalar_lea.vmem [#allocation2], %s713_s23 }
  0x35   : > { %s267_s14 = sshll.u32 %s260_s11, 4  ;;  %p1191_p11 = pnand %p796_p6, %p44_p8  ;;  %s1195_s14 = int_to_ptr.vmem [resolvable:$true] %s267_s14 }
  0x36   : > { %s1197_s10 = scalar_lea.sflag [#allocation3], %s256_s21 }
  0x37   : > { %p874_p0 = pneg %p1191_p11 }
  0x3a   : > { %s1189_s17 = scalar_lea.hbm %s1429_s0, %s737_s22  ;;  %s877_s22 = scalar_lea.hbm %s1429_s0, 512 }
  0x3b   : > { %s872_s16 = scalar_lea.hbm %s1189_s17, 256  ;;  %p878_p7 = scmp.lt.u32.totalorder %s1189_s17, %s1429_s0 }
  0x3c   : > { %p873_p13 = scmp.ne.s32.totalorder %s1189_s17, %s872_s16  ;;  %p879_p9 = scmp.lt.u32.totalorder %s877_s22, %s872_s16 }
  0x3d   : > { %p881_p1 = scmp.lt.u32.totalorder %s872_s16, %s1189_s17 }
  0x3e   : > { %p875_p3 = pnand %p874_p0, %p873_p13  ;;  %p880_p2 = por %p879_p9, %p878_p7 }
  0x40   : > { %p876_p5 = pneg %p875_p3  ;;  %p882_p4 = por %p881_p1, %p880_p2 }
  0x42   : > { %p883_p6 = pnand %p882_p4, %p876_p5 }
  0x44   : > { %886 = shalt.err (!%p883_p6)
}
  0x45   : > { %s887_s21 = scalar_lea.vmem %s1195_s14, 256  ;;  %s1037_s11 = smov [#allocation2]  }
  0x46   : > { %p888_p8 = scmp.ne.s32.totalorder %s1195_s14, %s887_s21  ;;  %s892_s29 = sshll.u32 %s1037_s11, 4  ;;  %s893_s29 = int_to_ptr.vmem [resolvable:$false] %s892_s29 }
  0x47   : > { %s894_s18 = scalar_lea.vmem %s893_s29, 512  ;;  %p895_p3 = scmp.lt.s32.totalorder %s1195_s14, %s893_s29 }
  0x48   : > { %p890_p10 = pnand %p888_p8, %p874_p0  ;;  %p896_p7 = scmp.lt.s32.totalorder %s894_s18, %s887_s21 }
  0x4a   : > { %p891_p13 = pneg %p890_p10  ;;  %p897_p9 = por %p896_p7, %p895_p3 }
  0x4c   : > { %p898_p2 = pnand %p897_p9, %p891_p13 }
  0x4e   : > { %901 = shalt.err (!%p898_p2)
}
  0x4f   : > { %s1038_s16 = smov 128   ;;  %s1039_s22 = smov 8  }
  0x50   : > { %784 = dma.hbm_to_vmem [thread:$0]  (!%p1191_p11), %s1189_s17, 256, %s1195_s14, %s1197_s10, %s1038_s16, %s1038_s16, %s1039_s22  }
  0x51   : > { %p1431_p0 = scmp.ne.s32.totalorder %s1425_s9, 0 }
  0x52   : > { %s1228_s23 = sand.u32 (!%p1431_p0), 1, %s1024_s25   ;;  %p1432_p5 = scmp.ne.s32.totalorder (!%p1431_p0), %s1423_s30, 0 }
  0x53   : > { %279 = sbr.rel (%p1431_p0) target bundleno = 777 (0x309), region = 40  ;;  %s1231_s12 = sshll.u32 (!%p1431_p0), %s1228_s23, 4 }
  0x54   : > { %s282_s21 = scalar_lea.sflag (!%p1431_p0), [#allocation3], %s1228_s23  ;;  %s285_s11 = scalar_lea.vmem (!%p1431_p0), [#allocation2], %s1231_s12 }
  0x5a   : > { %1003 = dma.done.wait (%p1432_p5), %s282_s21, 256  }
  0x5b   : > { %1005 = vsyncadd (%p1432_p5), %s282_s21, 4294967040  ;;  %p1433_p11 = scmp.eq.s32.totalorder %s1108_s28, 0 }
  0x5d   : > { %1007 = dma.done.wait (%p1433_p11), [#allocation6], 2048   ;;  %p1434_p1 = pmov %p1433_p11 }
  0x5e   : > { %vm338_vm0 = vcmask 523264   ;;  %v334_v0 = vld [vmem:[%s285_s11] sm:$0xff]  ;;  %v335_v1 = vld [vmem:[%s285_s11 + $0x8] sm:$0xff]  ;;  %v1040_v37 = vmov 0.0   ;;  %s1435_s1 = sld [smem:[#allocation16_spill]]  ;;  %v400_v55 = vlaneseq  ;;  %s1041_s29 = smov 64  }
  0x5f   : > { %1009 = vsyncadd (%p1434_p1), [#allocation6], 4294965248  ;;  %v339_v2 = vsel %vm338_vm0, %v334_v0, 0.0  ;;  %v342_v3 = vsel %vm338_vm0, %v335_v1, 0.0  ;;  %v383_v14 = vld [vmem:[#allocation5 + $0x8] sm:$0xff]  ;;  %v385_v15 = vld [vmem:[#allocation5 + $0x18] sm:$0xff]  ;;  %480 = vmatprep.mubr.f32.mxu0 %v1040_v37  ;;  %486 = vmatprep.mubr.f32.mxu1 %v1040_v37 }
  0x60   : > { %340 = vadd.xlane.f32.xlu0 %v339_v2  ;;  %v741_v16 = vpack.c.bf16 %v385_v15, %v383_v14  ;;  %v382_v17 = vld [vmem:[#allocation5] sm:$0xff]  ;;  %v384_v18 = vld [vmem:[#allocation5 + $0x10] sm:$0xff]  ;;  %v387_v20 = vld [vmem:[#allocation5 + $0x28] sm:$0xff]  ;;  %v401_v56 = vshrl.u32 %v400_v55, 7  ;;  %s1269_s18 = scalar_lea.vmem [#allocation10], %s1231_s12  ;;  %s1274_s16 = sshll.u32 %s1108_s28, 8 }
  0x61   : > { %v743_v19 = vpack.c.bf16 %v384_v18, %v382_v17  ;;  %v389_v21 = vld [vmem:[#allocation5 + $0x38] sm:$0xff]  ;;  %v386_v23 = vld [vmem:[#allocation5 + $0x20] sm:$0xff]  ;;  %v388_v24 = vld [vmem:[#allocation5 + $0x30] sm:$0xff]  ;;  %s315_s22 = scalar_lea.vmem [#allocation7], %s1231_s12  ;;  %s1282_s9 = scalar_lea.hbm %s1414_s5, %s1274_s16 }
  0x62   : > { %742 = vmatprep.subr.bf16.mxu0 %v741_v16  ;;  %757 = vmatprep.subr.bf16.mxu1 %v741_v16  ;;  %v745_v22 = vpack.c.bf16 %v389_v21, %v387_v20  ;;  %v747_v25 = vpack.c.bf16 %v388_v24, %v386_v23  ;;  %v391_v26 = vld [vmem:[#allocation5 + $0x48] sm:$0xff]  ;;  %v393_v27 = vld [vmem:[#allocation5 + $0x58] sm:$0xff]  ;;  %v390_v28 = vld [vmem:[#allocation5 + $0x40] sm:$0xff]  ;;  %v402_v57 = vsub.s32 0, %v401_v56  ;;  %v406_v59 = vsub.s32 1, %v401_v56  ;;  %s533_s21 = sshll.u32 %s315_s22, 4  ;;  %s1284_s21 = int_to_ptr.vmem [resolvable:$true] %s533_s21 }
  0x63   : > { %744 = vmatpush1.bf16.msra.mxu0 %v743_v19  ;;  %761 = vmatpush1.bf16.msra.mxu1 %v743_v19  ;;  %v749_v29 = vpack.c.bf16 %v393_v27, %v391_v26  ;;  %v392_v30 = vld [vmem:[#allocation5 + $0x50] sm:$0xff]  ;;  %v395_v31 = vld [vmem:[#allocation5 + $0x68] sm:$0xff]  ;;  %v397_v32 = vld [vmem:[#allocation5 + $0x78] sm:$0xff]  ;;  %s902_s14 = scalar_lea.vmem %s1284_s21, 256  ;;  %s1042_s15 = smov [#allocation7]  }
  0x64   : > { %343 = vadd.xlane.f32.xlu0 %v342_v3  ;;  %746 = vmatprep.subr.bf16.mxu0 %v745_v22  ;;  %v751_v33 = vpack.c.bf16 %v392_v30, %v390_v28  ;;  %v753_v34 = vpack.c.bf16 %v397_v32, %v395_v31  ;;  %v394_v35 = vld [vmem:[#allocation5 + $0x60] sm:$0xff]  ;;  %v396_v36 = vld [vmem:[#allocation5 + $0x70] sm:$0xff]  ;;  %p903_p4 = scmp.ne.s32.totalorder %s1284_s21, %s902_s14  ;;  %s906_s10 = sshll.u32 %s1042_s15, 4  ;;  %s907_s10 = int_to_ptr.vmem [resolvable:$false] %s906_s10 }
  0x65   : > { %758 = vmatprep.subr.bf16.mxu1 %v745_v22  ;;  %v755_v38 = vpack.c.bf16 %v396_v36, %v394_v35  ;;  %v722_v46 = vld [vmem:[%s1435_s1] ss:$0 sm:$0xff]  ;;  %p909_p10 = scmp.lt.s32.totalorder %s1284_s21, %s907_s10 }
  0x66   : > { %v723_v48 = vld [vmem:[%s1411_s2] ss:$0 sm:$0xff]  ;;  %p904_p6 = pnand %p903_p4, %p1180_p12 }
  0x67   : > { %748 = vmatpush1.bf16.msra.mxu0 %v747_v25  ;;  %762 = vmatpush1.bf16.msra.mxu1 %v747_v25  ;;  %v398_v58 = vld [vmem:[%s1413_s4] sm:$0x3] }
  0x68   : > { %750 = vmatprep.subr.bf16.mxu0 %v749_v29  ;;  %759 = vmatprep.subr.bf16.mxu1 %v749_v29  ;;  %v403_v60 = vrot.slane %v398_v58, %v402_v57  ;;  %v407_v61 = vrot.slane %v398_v58, %v406_v59  ;;  %p905_p8 = pneg %p904_p6 }
  0x6b   : > { %752 = vmatpush1.bf16.msra.mxu0 %v751_v33  ;;  %763 = vmatpush1.bf16.msra.mxu1 %v751_v33 }
  0x6c   : > { %754 = vmatprep.subr.bf16.mxu0 %v753_v34  ;;  %760 = vmatprep.subr.bf16.mxu1 %v753_v34 }
  0x6f   : > { %756 = vmatpush1.bf16.msra.mxu0 %v755_v38  ;;  %764 = vmatpush1.bf16.msra.mxu1 %v755_v38 }
  0xed   : > { %v341_v4 = vpop.xlane.xlu0 %340 }
  0xee   : > { %v346_v5 = vmul.f32 0.015625, %v341_v4 }
  0xf0   : > { %v1245_v6 = vsub.f32 %v334_v0, %v346_v5 }
  0xf1   : > { %v344_v7 = vpop.xlane.xlu0 %343 }
  0xf2   : > { %v347_v8 = vmul.f32 0.015625, %v344_v7  ;;  %v350_v9 = vmul.f32 %v1245_v6, %v1245_v6 }
  0xf4   : > { %v1249_v10 = vsub.f32 %v335_v1, %v347_v8  ;;  %v352_v11 = vsel %vm338_vm0, %v350_v9, 0.0 }
  0xf5   : > { %353 = vadd.xlane.f32.xlu1 %v352_v11 }
  0xf6   : > { %v351_v12 = vmul.f32 %v1249_v10, %v1249_v10 }
  0xf8   : > { %v355_v13 = vsel %vm338_vm0, %v351_v12, 0.0 }
  0xf9   : > { %356 = vadd.xlane.f32.xlu1 %v355_v13 }
 0x182   : > { %v354_v39 = vpop.xlane.xlu1 %353 }
 0x183   : > { %v358_v40 = vmul.f32 0.015625, %v354_v39 }
 0x185   : > { %v360_v41 = vadd.f32 1e-05, %v358_v40 }
 0x186   : > { %v357_v42 = vpop.xlane.xlu1 %356 }
 0x187   : > { %840 = vrsqrt.f32 %v360_v41  ;;  %v359_v43 = vmul.f32 0.015625, %v357_v42 }
 0x189   : > { %v361_v44 = vadd.f32 1e-05, %v359_v43 }
 0x18b   : > { %842 = vrsqrt.f32 %v361_v44 }
 0x191   : > { %v841_v45 = vpop.eup %840 }
 0x192   : > { %v364_v47 = vmul.f32 %v841_v45, %v1245_v6 }
 0x194   : > { %v372_v49 = vmul.f32 %v722_v46, %v364_v47 }
 0x195   : > { %v843_v50 = vpop.eup %842 }
 0x196   : > { %v380_v51 = vadd.f32 %v723_v48, %v372_v49  ;;  %v365_v52 = vmul.f32 %v843_v50, %v1249_v10 }
 0x198   : > { %724 = vmatmul.mubr.msk.f32.vlgmr.msra.gmra.mrb[0].mxu0 %vm338_vm0, %v380_v51  ;;  %v373_v53 = vmul.f32 %v722_v46, %v365_v52 }
 0x19a   : > { %v381_v54 = vadd.f32 %v723_v48, %v373_v53 }
 0x19c   : > { %725 = vmatmul.mubr.msk.f32.vlgmr.msra.gmra.mrb[0].mxu1 %vm338_vm0, %v381_v54 }
 0x26b   : > { %v482_v62 = vpop.f32.mrb[0].mxu0 }
 0x26c   : > { %v483_v63 = vadd.f32 %v482_v62, %v403_v60  ;;  %v484_v0 = vpop.f32.mrb[1].mxu0 }
 0x26d   : > { %v485_v1 = vadd.f32 %v484_v0, %v407_v61 }
 0x26e   : > { %v493_v2 = vmul.f32 0.25, %v483_v63  ;;  %499 = vrot.lane.b32.xlu0 %v483_v63, %s1041_s29 }
 0x26f   : > { %507 = vst.msk [vmem:[%s1269_s18] sm:$0xff] %vm338_vm0, %v485_v1  ;;  %v488_v3 = vpop.f32.mrb[0].mxu1 }
 0x270   : > { %495 = vst.msk [vmem:[%s315_s22] sm:$0xff] %vm338_vm0, %v493_v2  ;;  %v489_v4 = vadd.f32 %v488_v3, %v403_v60  ;;  %v490_v5 = vpop.f32.mrb[1].mxu1 }
 0x271   : > { %v491_v6 = vadd.f32 %v490_v5, %v407_v61 }
 0x272   : > { %v494_v7 = vmul.f32 0.25, %v489_v4  ;;  %501 = vrot.lane.b32.xlu1 %v489_v4, %s1041_s29  ;;  %s908_s29 = scalar_lea.vmem %s907_s10, 512 }
 0x273   : > { %508 = vst.msk [vmem:[%s1269_s18 + $0x8] sm:$0xff] %vm338_vm0, %v491_v6  ;;  %p910_p13 = scmp.lt.s32.totalorder %s908_s29, %s902_s14 }
 0x274   : > { %496 = vst.msk [vmem:[%s315_s22 + $0x8] sm:$0xff] %vm338_vm0, %v494_v7 }
 0x275   : > { %p911_p3 = por %p910_p13, %p909_p10 }
 0x277   : > { %p912_p7 = pnand %p911_p3, %p905_p8 }
 0x279   : > { %915 = shalt.err (!%p912_p7)
}
 0x27a   : > { %s916_s22 = scalar_lea.hbm %s1282_s9, 256  ;;  %s920_s15 = scalar_lea.hbm %s1414_s5, 512 }
 0x27b   : > { %p917_p9 = scmp.ne.s32.totalorder %s1282_s9, %s916_s22  ;;  %p921_p5 = scmp.lt.u32.totalorder %s1282_s9, %s1414_s5 }
 0x27c   : > { %p922_p11 = scmp.lt.u32.totalorder %s920_s15, %s916_s22  ;;  %p924_p4 = scmp.lt.u32.totalorder %s916_s22, %s1282_s9 }
 0x27d   : > { %p918_p2 = pnand %p917_p9, %p1180_p12 }
 0x27e   : > { %p923_p1 = por %p922_p11, %p921_p5 }
 0x27f   : > { %p919_p0 = pneg %p918_p2 }
 0x280   : > { %p925_p6 = por %p924_p4, %p923_p1 }
 0x282   : > { %p926_p8 = pnand %p925_p6, %p919_p0 }
 0x284   : > { %929 = shalt.err (!%p926_p8)
}
 0x285   : > { %s1043_s14 = smov 128   ;;  %s1044_s29 = smov 8  }
 0x286   : > { %s1436_s17 = scalar_lea.sflag [#allocation4], %s1228_s23  ;;  %s322_s22 = scalar_lea.vmem [#allocation8], %s1231_s12 }
 0x287   : > { %771 = dma.vmem_to_hbm [thread:$0]  (%p1180_p12), %s1284_s21, 256, %s1282_s9, %s1436_s17, %s1043_s14, %s1043_s14, %s1044_s29  }
 0x288   : > { %s549_s11 = sshll.u32 %s322_s22, 4  ;;  %s514_s30 = sand.u32 1, %s1108_s28   ;;  %s1320_s11 = int_to_ptr.vmem [resolvable:$true] %s549_s11 }
 0x289   : > { %s565_s15 = sshll.u32 %s1269_s18, 4  ;;  %s1326_s1 = scalar_lea.hbm %s1415_s6, %s1274_s16  ;;  %s1328_s15 = int_to_ptr.vmem [resolvable:$true] %s565_s15 }
 0x28a   : > { %s1334_s28 = scalar_lea.hbm %s1416_s7, %s1274_s16  ;;  %s1337_s18 = scalar_lea.sflag [#allocation9], %s514_s30 }
 0x28b   : > { %s930_s21 = scalar_lea.vmem %s1320_s11, 256  ;;  %s1045_s0 = smov [#allocation8]  }
 0x28c   : > { %p931_p10 = scmp.ne.s32.totalorder %s1320_s11, %s930_s21  ;;  %s934_s9 = sshll.u32 %s1045_s0, 4  ;;  %s935_s9 = int_to_ptr.vmem [resolvable:$false] %s934_s9 }
 0x28d   : > { %s936_s17 = scalar_lea.vmem %s935_s9, 512  ;;  %p937_p7 = scmp.lt.s32.totalorder %s1320_s11, %s935_s9 }
 0x28e   : > { %p932_p13 = pnand %p931_p10, %p1180_p12  ;;  %p938_p9 = scmp.lt.s32.totalorder %s936_s17, %s930_s21 }
 0x290   : > { %p933_p3 = pneg %p932_p13  ;;  %p939_p2 = por %p938_p9, %p937_p7 }
 0x292   : > { %p940_p0 = pnand %p939_p2, %p933_p3 }
 0x2e0   : > { %v500_v8 = vpop.permute.xlu0 %499 }
 0x2e1   : > { %505 = vst.msk [vmem:[%s322_s22] sm:$0xff] %vm338_vm0, %v500_v8 }
 0x2e4   : > { %v502_v9 = vpop.permute.xlu1 %501 }
 0x2e5   : > { %506 = vst.msk [vmem:[%s322_s22 + $0x8] sm:$0xff] %vm338_vm0, %v502_v9 }
 0x2e6   : > { %943 = shalt.err (!%p940_p0)
}
 0x2e7   : > { %s944_s16 = scalar_lea.hbm %s1326_s1, 256  ;;  %s948_s10 = scalar_lea.hbm %s1415_s6, 512 }
 0x2e8   : > { %p945_p5 = scmp.ne.s32.totalorder %s1326_s1, %s944_s16  ;;  %p949_p4 = scmp.lt.u32.totalorder %s1326_s1, %s1415_s6 }
 0x2e9   : > { %p950_p6 = scmp.lt.u32.totalorder %s948_s10, %s944_s16  ;;  %p952_p10 = scmp.lt.u32.totalorder %s944_s16, %s1326_s1 }
 0x2ea   : > { %p946_p11 = pnand %p945_p5, %p1180_p12 }
 0x2eb   : > { %p951_p8 = por %p950_p6, %p949_p4 }
 0x2ec   : > { %p947_p1 = pneg %p946_p11 }
 0x2ed   : > { %p953_p13 = por %p952_p10, %p951_p8 }
 0x2ef   : > { %p954_p3 = pnand %p953_p13, %p947_p1 }
 0x2f1   : > { %957 = shalt.err (!%p954_p3)
}
 0x2f2   : > { %772 = dma.vmem_to_hbm [thread:$0]  (%p1180_p12), %s1320_s11, 256, %s1326_s1, %s1337_s18, %s1043_s14, %s1043_s14, %s1044_s29  }
 0x2f3   : > { %s958_s21 = scalar_lea.vmem %s1328_s15, 256  ;;  %s1046_s0 = smov [#allocation10]  }
 0x2f4   : > { %p959_p7 = scmp.ne.s32.totalorder %s1328_s15, %s958_s21  ;;  %s962_s9 = sshll.u32 %s1046_s0, 4  ;;  %s963_s9 = int_to_ptr.vmem [resolvable:$false] %s962_s9 }
 0x2f5   : > { %s964_s17 = scalar_lea.vmem %s963_s9, 512  ;;  %p965_p0 = scmp.lt.s32.totalorder %s1328_s15, %s963_s9 }
 0x2f6   : > { %p960_p9 = pnand %p959_p7, %p1180_p12  ;;  %p966_p5 = scmp.lt.s32.totalorder %s964_s17, %s958_s21 }
 0x2f8   : > { %p961_p2 = pneg %p960_p9  ;;  %p967_p11 = por %p966_p5, %p965_p0 }
 0x2fa   : > { %p968_p1 = pnand %p967_p11, %p961_p2 }
 0x2fc   : > { %971 = shalt.err (!%p968_p1)
}
 0x2fd   : > { %s972_s1 = scalar_lea.hbm %s1334_s28, 256  ;;  %s976_s22 = scalar_lea.hbm %s1416_s7, 512 }
 0x2fe   : > { %p973_p4 = scmp.ne.s32.totalorder %s1334_s28, %s972_s1  ;;  %p977_p10 = scmp.lt.u32.totalorder %s1334_s28, %s1416_s7 }
 0x2ff   : > { %p978_p13 = scmp.lt.u32.totalorder %s976_s22, %s972_s1  ;;  %p980_p7 = scmp.lt.u32.totalorder %s972_s1, %s1334_s28 }
 0x300   : > { %p974_p6 = pnand %p973_p4, %p1180_p12 }
 0x301   : > { %p979_p3 = por %p978_p13, %p977_p10 }
 0x302   : > { %p975_p8 = pneg %p974_p6 }
 0x303   : > { %p981_p9 = por %p980_p7, %p979_p3 }
 0x305   : > { %p982_p2 = pnand %p981_p9, %p975_p8 }
 0x307   : > { %985 = shalt.err (!%p982_p2)
}
 0x308   : > { %773 = dma.vmem_to_hbm [thread:$0]  (%p1180_p12), %s1328_s15, 256, %s1334_s28, %s1337_s18, %s1043_s14, %s1043_s14, %s1044_s29  }
 0x309 PF: > { %s580_s23 = sand.u32 1, %s1020_s24   ;;  %p1437_p0 = scmp.ne.s32.totalorder %s1424_s8, 0 }
 0x30a   : > { %p1438_p5 = scmp.ge.s32.totalorder %s1032_s27, 2  ;;  %s581_s12 = scalar_lea.sflag [#allocation4], %s580_s23 }
 0x30c   : > { %p786_p11 = pnand %p1438_p5, %p1437_p0 }
 0x30e   : > { %1011 = dma.done.wait (!%p786_p11), %s581_s12, 256  }
 0x30f   : > { %1013 = vsyncadd (!%p786_p11), %s581_s12, 4294967040  ;;  %s1439_s20 = sadd.s32 4294967294, %s1032_s27  }
 0x310   : > { %s589_s21 = sand.u32 1, %s1439_s20  }
 0x311   : > { %s590_s0 = scalar_lea.sflag [#allocation9], %s589_s21 }
 0x312   : > { %1015 = dma.done.wait (!%p786_p11), %s590_s0, 512  }
 0x313   : > { %1017 = vsyncadd (!%p786_p11), %s590_s0, 4294966784  ;;  %p25_p12 = scmp.ge.s32.totalorder %s1145_s13, 4   ;;  %s1440_s24 = smov %s1024_s25 }
 0x314   : > { %s1441_s25 = smov %s1028_s26  ;;  %s1442_s26 = smov %s1176_s19 }
 0x315   : > { %s1443_s27 = smov %s1145_s13  ;;  %27 = sbr.rel (!%p25_p12) target bundleno = 11 (0xb), region = 121 }
 0x31c   :  { %604 = vsyncpa [#allocation3], 1 }
 0x31d   :  { %606 = vsyncpa [#allocation3 + $0x1], 1 }
 0x31e   :  { %607 = vsyncpa [#allocation6], 1 }
 0x31f   :  { %608 = vsyncpa [#allocation4], 1 }
 0x320   :  { %610 = vsyncpa [#allocation4 + $0x1], 1 }
 0x321   :  { %611 = vsyncpa [#allocation9], 1 }
 0x322   :  { %613 = vsyncpa [#allocation9 + $0x1], 1 }

</bundles_post_ra>
